<compile_context>
chip_gen: v7x
topology: tpu7x:2x2x1
jax: 0.10.0
libtpu: 0.0.40
codegen_flags: <defaults>
</compile_context>

<pallas_src>
import jax
import jax.numpy as jnp
from jax.experimental import pallas as pl
from jax.experimental.pallas import tpu as pltpu

# --- scaled-down synthetic config ---------------------------------------
IN_CH = 3            # RGB input images
FEAT = 128           # stands in for resnet.fc.in_features (= 2048); multiple of 128
EMBED = 256          # embedding_size from the spec; multiple of 128
H = W = 16
HW = H * W
KTAPS = 9 * IN_CH    # 3x3 taps * channels = 27
KDIM = 32            # zero-padded contraction dim for a single fused MXU matmul
BN_EPS = 1e-5        # PyTorch BatchNorm1d default eps
MAX_BB = 8           # images per grid step


# --- kernel 1: fused conv stem + ReLU + global avg-pool + Linear (per batch block) -----
def conv_head_kernel(p_ref, cw_ref, cb_ref, lw_ref, lb_ref, z_ref):
    # p_ref:  (BB, HW, 32)   pre-im2col'd patches, bf16
    # cw_ref: (32, FEAT)     fused conv weight (rows 27..31 zero), bf16
    # cb_ref: (1, FEAT)      conv bias, f32
    # lw_ref: (FEAT, EMBED)  linear weight, pre-transposed, bf16
    # lb_ref: (1, EMBED)     linear bias, f32
    # z_ref:  (BB, EMBED)    pre-BN linear output block, f32
    bb = p_ref.shape[0]

    patches = p_ref[...].reshape(bb * HW, KDIM)                       # bf16, M = bb*256
    acc = jnp.dot(patches, cw_ref[...],
                  preferred_element_type=jnp.float32)                 # (bb*HW, FEAT) f32
    acc = jnp.maximum(acc + cb_ref[...], 0.0)                         # bias + ReLU

    # global average pool (== AdaptiveAvgPool2d((1,1)) + flatten) per image
    pooled = jnp.mean(acc.reshape(bb, HW, FEAT), axis=1)              # (bb, FEAT) f32

    # Linear head; BN is applied in a separate tiny kernel over the full batch.
    z_ref[...] = (jnp.dot(pooled.astype(jnp.bfloat16), lw_ref[...],
                          preferred_element_type=jnp.float32) + lb_ref[...])


# --- kernel 2: BatchNorm1d over the full batch (training-mode batch statistics) --------
def batchnorm_kernel(z_ref, g_ref, beta_ref, o_ref):
    z = z_ref[...]                                                    # (N, EMBED) f32
    mu = jnp.mean(z, axis=0, keepdims=True)
    var = jnp.mean((z - mu) ** 2, axis=0, keepdims=True)              # biased batch var
    o_ref[...] = g_ref[...] * (z - mu) * jax.lax.rsqrt(var + BN_EPS) + beta_ref[...]


# --- params ---------------------------------------------------------------------------
def init_params(key):
    k1, k2, k3, k4 = jax.random.split(key, 4)
    # fused conv weight: (27, FEAT) in (tap, channel)-major order, zero-padded to 32 rows
    conv_w_taps = jax.random.normal(k1, (KTAPS, FEAT), jnp.float32) * 0.1
    conv_w = jnp.pad(conv_w_taps, ((0, KDIM - KTAPS), (0, 0))).astype(jnp.bfloat16)
    conv_b = jax.random.normal(k2, (1, FEAT), jnp.float32) * 0.1
    # PyTorch Linear stores (E, F); pre-transpose ONCE so no per-forward .T is needed.
    lin_w_pt = jax.random.normal(k3, (EMBED, FEAT), jnp.float32) * 0.1
    lin_w = jnp.transpose(lin_w_pt).astype(jnp.bfloat16)              # (FEAT, EMBED)
    lin_b = jax.random.normal(k4, (1, EMBED), jnp.float32) * 0.1
    bn_gamma = jnp.ones((1, EMBED), jnp.float32)
    bn_beta = jnp.zeros((1, EMBED), jnp.float32)
    return dict(conv_w=conv_w, conv_b=conv_b, lin_w=lin_w, lin_b=lin_b,
                bn_gamma=bn_gamma, bn_beta=bn_beta)


# --- wrapper-side im2col (pad + 9 shifted slices + zero-pad K to 32 + bf16 cast) --------
def _im2col(x_nchw):
    n = x_nchw.shape[0]
    x = jnp.transpose(x_nchw, (0, 2, 3, 1)).astype(jnp.float32)       # NHWC
    xp = jnp.pad(x, ((0, 0), (1, 1), (1, 1), (0, 0)))                 # (N, H+2, W+2, C)
    taps = [xp[:, dy:dy + H, dx:dx + W, :]
            for dy in range(3) for dx in range(3)]                    # 9 x (N, H, W, C)
    p = jnp.concatenate(taps, axis=-1)                                # (N, H, W, 27)
    p = jnp.pad(p, ((0, 0), (0, 0), (0, 0), (0, KDIM - KTAPS)))       # (N, H, W, 32)
    return p.reshape(n, HW, KDIM).astype(jnp.bfloat16)


# --- forward --------------------------------------------------------------------------
@jax.jit
def cnn_model_forward(x_nchw, params):
    n = x_nchw.shape[0]
    assert n >= 2, "training-mode BatchNorm1d needs batch >= 2 (matches PyTorch)"

    patches = _im2col(x_nchw)                                         # (n, HW, 32) bf16

    bb = min(MAX_BB, n)
    n_pad = pl.cdiv(n, bb) * bb
    if n_pad != n:
        patches = jnp.pad(patches, ((0, n_pad - n), (0, 0), (0, 0)))  # zero images

    flops = 2 * n_pad * HW * KDIM * FEAT + 2 * n_pad * FEAT * EMBED
    bytes_accessed = (n_pad * HW * KDIM * 2                           # patches (bf16)
                      + KDIM * FEAT * 2 + FEAT * EMBED * 2            # weights (bf16)
                      + (FEAT + EMBED) * 4                            # biases (f32)
                      + n_pad * EMBED * 4)                            # z output (f32)

    z = pl.pallas_call(
        conv_head_kernel,
        out_shape=jax.ShapeDtypeStruct((n_pad, EMBED), jnp.float32),
        grid_spec=pltpu.PrefetchScalarGridSpec(
            num_scalar_prefetch=0,
            grid=(n_pad // bb,),
            in_specs=[
                pl.BlockSpec((bb, HW, KDIM), lambda i: (i, 0, 0)),    # patch block
                pl.BlockSpec((KDIM, FEAT), lambda i: (0, 0)),         # resident weights
                pl.BlockSpec((1, FEAT), lambda i: (0, 0)),
                pl.BlockSpec((FEAT, EMBED), lambda i: (0, 0)),
                pl.BlockSpec((1, EMBED), lambda i: (0, 0)),
            ],
            out_specs=pl.BlockSpec((bb, EMBED), lambda i: (i, 0)),
        ),
        compiler_params=pltpu.CompilerParams(
            # Each step is independent (BN pulled out) -> shardable across v7x's 2 TCs.
            dimension_semantics=("parallel",),
            vmem_limit_bytes=8 * 1024 * 1024,
        ),
        cost_estimate=pl.CostEstimate(flops=flops, transcendentals=0,
                                      bytes_accessed=bytes_accessed),
    )(patches, params["conv_w"], params["conv_b"], params["lin_w"], params["lin_b"])

    z = z[:n]                                                         # drop batch padding

    out = pl.pallas_call(
        batchnorm_kernel,
        out_shape=jax.ShapeDtypeStruct((n, EMBED), jnp.float32),
        grid_spec=pltpu.PrefetchScalarGridSpec(
            num_scalar_prefetch=0,
            grid=(1,),
            in_specs=[
                pl.BlockSpec((n, EMBED), lambda i: (0, 0)),
                pl.BlockSpec((1, EMBED), lambda i: (0, 0)),
                pl.BlockSpec((1, EMBED), lambda i: (0, 0)),
            ],
            out_specs=pl.BlockSpec((n, EMBED), lambda i: (0, 0)),
        ),
        compiler_params=pltpu.CompilerParams(
            dimension_semantics=("arbitrary",),
            vmem_limit_bytes=4 * 1024 * 1024,
        ),
        cost_estimate=pl.CostEstimate(flops=6 * n * EMBED, transcendentals=EMBED,
                                      bytes_accessed=2 * n * EMBED * 4 + 2 * EMBED * 4),
    )(z, params["bn_gamma"], params["bn_beta"])
    return out


# --- pure-JAX reference (mirrors the kernel's bf16 matmul / f32 accumulation) ----------
def reference_forward(x_nchw, params):
    patches = _im2col(x_nchw)                                         # (n, HW, 32) bf16
    acc = jnp.einsum("npk,kf->npf", patches, params["conv_w"],
                     preferred_element_type=jnp.float32)
    feats = jnp.maximum(acc + params["conv_b"], 0.0)
    pooled = feats.mean(axis=1)                                       # (n, FEAT)
    z = jnp.dot(pooled.astype(jnp.bfloat16), params["lin_w"],
                preferred_element_type=jnp.float32) + params["lin_b"]
    mu = z.mean(axis=0, keepdims=True)
    var = ((z - mu) ** 2).mean(axis=0, keepdims=True)
    return params["bn_gamma"] * (z - mu) * jax.lax.rsqrt(var + BN_EPS) + params["bn_beta"]


if __name__ == "__main__":
    key = jax.random.PRNGKey(0)
    k_x, k_p = jax.random.split(key)
    x = jax.random.normal(k_x, (2, IN_CH, H, W), jnp.float32)         # NCHW, like PyTorch
    params = init_params(k_p)

    out = jax.block_until_ready(cnn_model_forward(x, params))
    ref = reference_forward(x, params)

    assert out.shape == (2, EMBED)
    assert jnp.allclose(out, ref, atol=2e-3, rtol=2e-3), "mismatch vs JAX reference"
    print("KERNEL_OK")
</pallas_src>

<mosaic_0001>
module attributes {stable_mosaic.version = 11 : i64} {
  func.func @conv_head_kernel(%arg0: i32, %arg1: memref<2x256x32xbf16, #tpu.memory_space<vmem>>, %arg2: memref<32x128xbf16, #tpu.memory_space<vmem>>, %arg3: memref<1x128xf32, #tpu.memory_space<vmem>>, %arg4: memref<128x256xbf16, #tpu.memory_space<vmem>>, %arg5: memref<1x256xf32, #tpu.memory_space<vmem>>, %arg6: memref<2x256xf32, #tpu.memory_space<vmem>>) attributes {dimension_semantics = [#tpu.dimension_semantics<parallel>], iteration_bounds = array<i64: 1>, scalar_prefetch = 0 : i64, scratch_operands = 0 : i64, tpu.core_type = #tpu.core_type<tc>, window_params = [{transform_indices = @transform_0, window_bounds = array<i64: 2, 256, 32>}, {pipeline_mode = #tpu.pipeline_mode<synchronous>, transform_indices = @transform_1, window_bounds = array<i64: 32, 128>}, {pipeline_mode = #tpu.pipeline_mode<synchronous>, transform_indices = @transform_2, window_bounds = array<i64: 1, 128>}, {pipeline_mode = #tpu.pipeline_mode<synchronous>, transform_indices = @transform_3, window_bounds = array<i64: 128, 256>}, {pipeline_mode = #tpu.pipeline_mode<synchronous>, transform_indices = @transform_4, window_bounds = array<i64: 1, 256>}, {transform_indices = @transform_5, window_bounds = array<i64: 2, 256>}]} {
    %c0 = arith.constant 0 : index
    %c0_0 = arith.constant 0 : index
    %c0_1 = arith.constant 0 : index
    %0 = vector.load %arg1[%c0, %c0_0, %c0_1] : memref<2x256x32xbf16, #tpu.memory_space<vmem>>, vector<2x256x32xbf16>
    %1 = vector.shape_cast %0 : vector<2x256x32xbf16> to vector<512x32xbf16>
    %c0_2 = arith.constant 0 : index
    %c0_3 = arith.constant 0 : index
    %2 = vector.load %arg2[%c0_2, %c0_3] : memref<32x128xbf16, #tpu.memory_space<vmem>>, vector<32x128xbf16>
    %cst = arith.constant dense<0.000000e+00> : vector<512x128xf32>
    %3 = tpu.matmul %1, %2, %cst {dimension_numbers = #tpu.dot_dimension_numbers<[1], [0], [0], [1], [0, 0, 1, 1], [], []>} : vector<512x32xbf16>, vector<32x128xbf16>, vector<512x128xf32> -> vector<512x128xf32>
    %c0_4 = arith.constant 0 : index
    %c0_5 = arith.constant 0 : index
    %4 = vector.load %arg3[%c0_4, %c0_5] : memref<1x128xf32, #tpu.memory_space<vmem>>, vector<1x128xf32>
    %5 = vector.broadcast %4 : vector<1x128xf32> to vector<512x128xf32>
    %6 = arith.addf %3, %5 : vector<512x128xf32>
    %cst_6 = arith.constant 0.000000e+00 : f32
    %7 = vector.broadcast %cst_6 : f32 to vector<512x128xf32>
    %8 = arith.maximumf %6, %7 : vector<512x128xf32>
    %9 = vector.shape_cast %8 : vector<512x128xf32> to vector<2x256x128xf32>
    %cst_7 = arith.constant dense<0.000000e+00> : vector<2x128xf32>
    %10 = vector.multi_reduction <add>, %9, %cst_7 [1] : vector<2x256x128xf32> to vector<2x128xf32>
    %cst_8 = arith.constant 2.560000e+02 : f32
    %11 = vector.broadcast %cst_8 : f32 to vector<2x128xf32>
    %12 = arith.divf %10, %11 : vector<2x128xf32>
    %13 = arith.truncf %12 : vector<2x128xf32> to vector<2x128xbf16>
    %c0_9 = arith.constant 0 : index
    %c0_10 = arith.constant 0 : index
    %14 = vector.load %arg4[%c0_9, %c0_10] : memref<128x256xbf16, #tpu.memory_space<vmem>>, vector<128x256xbf16>
    %cst_11 = arith.constant dense<0.000000e+00> : vector<2x256xf32>
    %15 = tpu.matmul %13, %14, %cst_11 {dimension_numbers = #tpu.dot_dimension_numbers<[1], [0], [0], [1], [0, 0, 1, 1], [], []>} : vector<2x128xbf16>, vector<128x256xbf16>, vector<2x256xf32> -> vector<2x256xf32>
    %c0_12 = arith.constant 0 : index
    %c0_13 = arith.constant 0 : index
    %16 = vector.load %arg5[%c0_12, %c0_13] : memref<1x256xf32, #tpu.memory_space<vmem>>, vector<1x256xf32>
    %17 = vector.broadcast %16 : vector<1x256xf32> to vector<2x256xf32>
    %18 = arith.addf %15, %17 : vector<2x256xf32>
    %c0_14 = arith.constant 0 : index
    %c0_15 = arith.constant 0 : index
    %19 = vector.load %arg6[%c0_14, %c0_15] : memref<2x256xf32, #tpu.memory_space<vmem>>, vector<2x256xf32>
    tpu.vector_store %arg6[%c0_14, %c0_15], %18 {strides = array<i32>} : memref<2x256xf32, #tpu.memory_space<vmem>>, vector<2x256xf32>,
    return
  }
  func.func @transform_0(%arg0: i32) -> (i32, i32, i32) {
    %c0_i32 = arith.constant 0 : i32
    %c0_i32_0 = arith.constant 0 : i32
    %c0_i32_1 = arith.constant 0 : i32
    return %arg0, %c0_i32, %c0_i32_0 : i32, i32, i32
  }
  func.func @transform_1(%arg0: i32) -> (i32, i32) {
    %c0_i32 = arith.constant 0 : i32
    %c0_i32_0 = arith.constant 0 : i32
    %c0_i32_1 = arith.constant 0 : i32
    return %c0_i32, %c0_i32_0 : i32, i32
  }
  func.func @transform_2(%arg0: i32) -> (i32, i32) {
    %c0_i32 = arith.constant 0 : i32
    %c0_i32_0 = arith.constant 0 : i32
    %c0_i32_1 = arith.constant 0 : i32
    return %c0_i32, %c0_i32_0 : i32, i32
  }
  func.func @transform_3(%arg0: i32) -> (i32, i32) {
    %c0_i32 = arith.constant 0 : i32
    %c0_i32_0 = arith.constant 0 : i32
    %c0_i32_1 = arith.constant 0 : i32
    return %c0_i32, %c0_i32_0 : i32, i32
  }
  func.func @transform_4(%arg0: i32) -> (i32, i32) {
    %c0_i32 = arith.constant 0 : i32
    %c0_i32_0 = arith.constant 0 : i32
    %c0_i32_1 = arith.constant 0 : i32
    return %c0_i32, %c0_i32_0 : i32, i32
  }
  func.func @transform_5(%arg0: i32) -> (i32, i32) {
    %c0_i32 = arith.constant 0 : i32
    %c0_i32_0 = arith.constant 0 : i32
    return %arg0, %c0_i32 : i32, i32
  }
}

module attributes {stable_mosaic.version = 11 : i64} {
  func.func @batchnorm_kernel(%arg0: i32, %arg1: memref<2x256xf32, #tpu.memory_space<vmem>>, %arg2: memref<1x256xf32, #tpu.memory_space<vmem>>, %arg3: memref<1x256xf32, #tpu.memory_space<vmem>>, %arg4: memref<2x256xf32, #tpu.memory_space<vmem>>) attributes {dimension_semantics = [#tpu.dimension_semantics<arbitrary>], iteration_bounds = array<i64: 1>, scalar_prefetch = 0 : i64, scratch_operands = 0 : i64, tpu.core_type = #tpu.core_type<tc>, window_params = [{pipeline_mode = #tpu.pipeline_mode<synchronous>, transform_indices = @transform_0, window_bounds = array<i64: 2, 256>}, {pipeline_mode = #tpu.pipeline_mode<synchronous>, transform_indices = @transform_1, window_bounds = array<i64: 1, 256>}, {pipeline_mode = #tpu.pipeline_mode<synchronous>, transform_indices = @transform_2, window_bounds = array<i64: 1, 256>}, {pipeline_mode = #tpu.pipeline_mode<synchronous>, transform_indices = @transform_3, window_bounds = array<i64: 2, 256>}]} {
    %c0 = arith.constant 0 : index
    %c0_0 = arith.constant 0 : index
    %0 = vector.load %arg1[%c0, %c0_0] : memref<2x256xf32, #tpu.memory_space<vmem>>, vector<2x256xf32>
    %cst = arith.constant dense<0.000000e+00> : vector<256xf32>
    %1 = vector.multi_reduction <add>, %0, %cst [0] : vector<2x256xf32> to vector<256xf32>
    %2 = vector.shape_cast %1 : vector<256xf32> to vector<1x256xf32>
    %cst_1 = arith.constant 2.000000e+00 : f32
    %3 = vector.broadcast %cst_1 : f32 to vector<1x256xf32>
    %4 = arith.divf %2, %3 : vector<1x256xf32>
    %5 = vector.broadcast %4 : vector<1x256xf32> to vector<2x256xf32>
    %6 = arith.subf %0, %5 : vector<2x256xf32>
    %7 = arith.mulf %6, %6 : vector<2x256xf32>
    %cst_2 = arith.constant dense<0.000000e+00> : vector<256xf32>
    %8 = vector.multi_reduction <add>, %7, %cst_2 [0] : vector<2x256xf32> to vector<256xf32>
    %9 = vector.shape_cast %8 : vector<256xf32> to vector<1x256xf32>
    %cst_3 = arith.constant 2.000000e+00 : f32
    %10 = vector.broadcast %cst_3 : f32 to vector<1x256xf32>
    %11 = arith.divf %9, %10 : vector<1x256xf32>
    %c0_4 = arith.constant 0 : index
    %c0_5 = arith.constant 0 : index
    %12 = vector.load %arg2[%c0_4, %c0_5] : memref<1x256xf32, #tpu.memory_space<vmem>>, vector<1x256xf32>
    %13 = vector.broadcast %4 : vector<1x256xf32> to vector<2x256xf32>
    %14 = arith.subf %0, %13 : vector<2x256xf32>
    %15 = vector.broadcast %12 : vector<1x256xf32> to vector<2x256xf32>
    %16 = arith.mulf %15, %14 : vector<2x256xf32>
    %cst_6 = arith.constant 9.99999974E-6 : f32
    %17 = vector.broadcast %cst_6 : f32 to vector<1x256xf32>
    %18 = arith.addf %11, %17 : vector<1x256xf32>
    %19 = math.rsqrt %18 : vector<1x256xf32>
    %20 = vector.broadcast %19 : vector<1x256xf32> to vector<2x256xf32>
    %21 = arith.mulf %16, %20 : vector<2x256xf32>
    %c0_7 = arith.constant 0 : index
    %c0_8 = arith.constant 0 : index
    %22 = vector.load %arg3[%c0_7, %c0_8] : memref<1x256xf32, #tpu.memory_space<vmem>>, vector<1x256xf32>
    %23 = vector.broadcast %22 : vector<1x256xf32> to vector<2x256xf32>
    %24 = arith.addf %21, %23 : vector<2x256xf32>
    %c0_9 = arith.constant 0 : index
    %c0_10 = arith.constant 0 : index
    %25 = vector.load %arg4[%c0_9, %c0_10] : memref<2x256xf32, #tpu.memory_space<vmem>>, vector<2x256xf32>
    tpu.vector_store %arg4[%c0_9, %c0_10], %24 {strides = array<i32>} : memref<2x256xf32, #tpu.memory_space<vmem>>, vector<2x256xf32>,
    return
  }
  func.func @transform_0(%arg0: i32) -> (i32, i32) {
    %c0_i32 = arith.constant 0 : i32
    %c0_i32_0 = arith.constant 0 : i32
    %c0_i32_1 = arith.constant 0 : i32
    return %c0_i32, %c0_i32_0 : i32, i32
  }
  func.func @transform_1(%arg0: i32) -> (i32, i32) {
    %c0_i32 = arith.constant 0 : i32
    %c0_i32_0 = arith.constant 0 : i32
    %c0_i32_1 = arith.constant 0 : i32
    return %c0_i32, %c0_i32_0 : i32, i32
  }
  func.func @transform_2(%arg0: i32) -> (i32, i32) {
    %c0_i32 = arith.constant 0 : i32
    %c0_i32_0 = arith.constant 0 : i32
    %c0_i32_1 = arith.constant 0 : i32
    return %c0_i32, %c0_i32_0 : i32, i32
  }
  func.func @transform_3(%arg0: i32) -> (i32, i32) {
    %c0_i32 = arith.constant 0 : i32
    %c0_i32_0 = arith.constant 0 : i32
    %c0_i32_1 = arith.constant 0 : i32
    return %c0_i32, %c0_i32_0 : i32, i32
  }
}

</mosaic_0001>

<bundles_post_ra>
// kernel: cnn_model_forward.3
= control target key start
LH: loop header
LB: loop body
LE: loop exit
PB: predicated region body
PF: predicated region fallthrough
CT: control target
= control target key end

     0   :  { %v20_v0 = vlaneseq  ;;  %v187_v1 = vmov 1983009808   ;;  %s239_s0 = inlined_call_operand.vmem [shape: f32[2,256], index: 0, kind: input, shape index: {}]   ;;  %s240_s1 = inlined_call_operand.vmem [shape: f32[1,256], index: 1, kind: input, shape index: {}]   ;;  %s241_s2 = inlined_call_operand.vmem [shape: f32[1,256], index: 2, kind: input, shape index: {}]   ;;  %s242_s3 = inlined_call_operand.hbm [shape: f32[2,256], index: 3, kind: output, shape index: {}]  }
   0x1   :  { %v18_v2 = vunpack.c.l.s4 %v187_v1 }
   0x2   :  { %8 = vsyncpa [#allocation3], 0  ;;  %v209_v3 = vshrl.u32 %v20_v0, 7  ;;  %v15_v5 = vld [vmem:[%s239_s0] sm:$0xf]  ;;  %vm27_vm0 = vcmask 1041408  }
   0x3   :  { %v19_v4 = vunpack.c.0.s8 %v18_v2  ;;  %v85_v49 = vld [vmem:[%s240_s1] sm:$0x3]  ;;  %s188_s1 = smov [#allocation2]  }
   0x4   :  { %v89_v48 = vsub.s32 0, %v209_v3  ;;  %v93_v51 = vsub.s32 1, %v209_v3  ;;  %v116_v56 = vld [vmem:[%s241_s2] sm:$0x3]  ;;  %s148_s17 = sshll.u32 %s188_s1, 4  ;;  %s149_s17 = int_to_ptr.vmem [resolvable:$true] %s148_s17 }
   0x5   :  { %v22_v6 = vsub.s32 %v19_v4, %v209_v3  ;;  %s163_s18 = scalar_lea.vmem %s149_s17, 64  ;;  %p168_p1 = scmp.lt.s32.totalorder %s149_s17, %s149_s17 }
   0x6   :  { %v90_v53 = vrot.slane %v85_v49, %v89_v48  ;;  %v94_v54 = vrot.slane %v85_v49, %v93_v51  ;;  %v121_v59 = vrot.slane %v116_v56, %v89_v48  ;;  %v125_v62 = vrot.slane %v116_v56, %v93_v51  ;;  %p164_p0 = scmp.ne.s32.totalorder %s149_s17, %s163_s18  ;;  %p169_p2 = scmp.lt.s32.totalorder %s163_s18, %s163_s18 }
   0x7   :  { %v23_v7 = vrot.slane %v15_v5, %v22_v6 }
   0x8   :  { %p170_p3 = por %p169_p2, %p168_p1 }
   0x9   :  { %v24_v8 = vcombine.high %v23_v7, %v23_v7  ;;  %v28_v9 = vsel %vm27_vm0, %v23_v7, 0.0 }
   0xa   :  { %v29_v10 = vrot.slane %v28_v9, 4  ;;  %p171_p4 = pnand %p170_p3, %p164_p0 }
   0xb   :  { %v35_v11 = vsel %vm27_vm0, %v24_v8, 0.0 }
   0xc   :  { %v30_v12 = vadd.f32 %v29_v10, %v28_v9  ;;  %v36_v13 = vrot.slane %v35_v11, 4 }
   0xe   :  { %v31_v14 = vrot.slane %v30_v12, 2  ;;  %v37_v15 = vadd.f32 %v36_v13, %v35_v11 }
  0x10   :  { %v32_v16 = vadd.f32 %v31_v14, %v30_v12  ;;  %v38_v17 = vrot.slane %v37_v15, 2 }
  0x12   :  { %v33_v18 = vrot.slane %v32_v16, 1  ;;  %v39_v19 = vadd.f32 %v38_v17, %v37_v15 }
  0x14   :  { %v34_v20 = vadd.f32 %v33_v18, %v32_v16  ;;  %v40_v21 = vrot.slane %v39_v19, 1 }
  0x16   :  { %v41_v22 = vadd.f32 %v40_v21, %v39_v19  ;;  %v43_v23 = vmul.f32 0.5, %v34_v20 }
  0x18   :  { %v44_v24 = vmul.f32 0.5, %v41_v22 }
  0x1a   :  { %v47_v25 = vcombine.low %v43_v23, %v44_v24 }
  0x1c   :  { %v54_v26 = vrot.slane %v47_v25, %v22_v6 }
  0x1e   :  { %v56_v27 = vsub.f32 %v15_v5, %v54_v26 }
  0x20   :  { %v57_v28 = vmul.f32 %v56_v27, %v56_v27  ;;  %v104_v52 = vrot.slane %v56_v27, %v22_v6 }
  0x22   :  { %v65_v29 = vrot.slane %v57_v28, %v22_v6  ;;  %v105_v55 = vcombine.high %v104_v52, %v104_v52  ;;  %v108_v57 = vmul.f32 %v104_v52, %v90_v53 }
  0x24   :  { %v66_v30 = vcombine.high %v65_v29, %v65_v29  ;;  %v69_v31 = vsel %vm27_vm0, %v65_v29, 0.0  ;;  %v109_v58 = vmul.f32 %v105_v55, %v94_v54 }
  0x25   :  { %v70_v32 = vrot.slane %v69_v31, 4 }
  0x26   :  { %v76_v33 = vsel %vm27_vm0, %v66_v30, 0.0 }
  0x27   :  { %v71_v34 = vadd.f32 %v70_v32, %v69_v31  ;;  %v77_v35 = vrot.slane %v76_v33, 4 }
  0x29   :  { %v72_v36 = vrot.slane %v71_v34, 2  ;;  %v78_v37 = vadd.f32 %v77_v35, %v76_v33 }
  0x2b   :  { %v73_v38 = vadd.f32 %v72_v36, %v71_v34  ;;  %v79_v39 = vrot.slane %v78_v37, 2 }
  0x2d   :  { %v74_v40 = vrot.slane %v73_v38, 1  ;;  %v80_v41 = vadd.f32 %v79_v39, %v78_v37 }
  0x2f   :  { %v75_v42 = vadd.f32 %v74_v40, %v73_v38  ;;  %v81_v43 = vrot.slane %v80_v41, 1 }
  0x31   :  { %v82_v44 = vadd.f32 %v81_v43, %v80_v41  ;;  %v83_v45 = vmul.f32 0.5, %v75_v42 }
  0x33   :  { %v84_v46 = vmul.f32 0.5, %v82_v44  ;;  %v110_v47 = vadd.f32 1e-05, %v83_v45 }
  0x35   :  { %v111_v50 = vadd.f32 1e-05, %v84_v46  ;;  %159 = vrsqrt.f32 %v110_v47 }
  0x37   :  { %161 = vrsqrt.f32 %v111_v50 }
  0x3f   :  { %v160_v60 = vpop.eup %159 }
  0x40   :  { %v114_v61 = vmul.f32 %v160_v60, %v108_v57 }
  0x41   :  { %v162_v63 = vpop.eup %161 }
  0x42   :  { %v115_v0 = vmul.f32 %v162_v63, %v109_v58  ;;  %v128_v1 = vadd.f32 %v121_v59, %v114_v61 }
  0x44   :  { %v129_v2 = vadd.f32 %v125_v62, %v115_v0 }
  0x46   :  { %v132_v3 = vcombine.low %v128_v1, %v129_v2 }
  0x48   :  { %156 = vst.sshfl [vmem:[#allocation2] sm:$0x33 pattern:$0x76325410] %v132_v3 }
  0x49   :  { %174 = shalt.err (!%p171_p4)
}
  0x4a   :  { %s175_s20 = scalar_lea.hbm %s242_s3, 64 }
  0x4b   :  { %p176_p5 = scmp.ne.s32.totalorder %s242_s3, %s175_s20  ;;  %p179_p6 = scmp.lt.u32.totalorder %s175_s20, %s242_s3 }
  0x4d   :  { %p181_p7 = pnand %p179_p6, %p176_p5 }
  0x4f   :  { %184 = shalt.err (!%p181_p7)
}
  0x50   :  { %151 = dma.vmem_to_hbm [thread:$0]  %s149_s17, 64, %s242_s3, [#allocation3]  }
  0x51   :  { %185 = dma.done.wait [#allocation3], 64  }
  0x52   :  { %186 = vsyncadd [#allocation3], 4294967232 }
  0x53   :  { %155 = vsyncpa [#allocation3], 1 }

// kernel: cnn_model_forward.2
= control target key start
LH: loop header
LB: loop body
LE: loop exit
PB: predicated region body
PF: predicated region fallthrough
CT: control target
= control target key end

     0   :  { %vm268_vm0 = vcmask 261120   ;;  %vm829_vm1 = vcmask 1041409   ;;  %s1595_s1 = inlined_call_operand.vmem [shape: bf16[32,128], index: 1, kind: input, shape index: {}]   ;;  %s1596_s0 = inlined_call_operand.vmem [shape: bf16[2,256,32], index: 0, kind: input, shape index: {}]   ;;  %s1597_s3 = inlined_call_operand.vmem [shape: bf16[128,256], index: 3, kind: input, shape index: {}]   ;;  %s1598_s2 = inlined_call_operand.vmem [shape: f32[1,128], index: 2, kind: input, shape index: {}]   ;;  %s1599_s4 = inlined_call_operand.vmem [shape: f32[1,256], index: 4, kind: input, shape index: {}]   ;;  %s1600_s5 = inlined_call_operand.vmem [shape: f32[2,256], index: 5, kind: output, shape index: {}]  }
   0x1   :  { %v1161_v0 = vld [vmem:[%s1595_s1] sm:$0xff]   ;;  %v1162_v1 = vld [vmem:[%s1595_s1 + $0x8] sm:$0xff]   ;;  %v1165_v4 = vld [vmem:[%s1596_s0 + $0x10] sm:$0xff]  }
   0x2   :  { %1088 = vmatprep.subr.bf16.mxu0 %v1161_v0  ;;  %v1163_v2 = vld [vmem:[%s1596_s0] sm:$0xff]   ;;  %1156 = vmatprep.subr.bf16.mxu1 %v1161_v0  ;;  %v1164_v3 = vld [vmem:[%s1596_s0 + $0x8] sm:$0xff]   ;;  %v1166_v5 = vld [vmem:[%s1596_s0 + $0x18] sm:$0xff]  }
   0x3   :  { %1089 = vmatpush3.bf16.msra.mxu0 %v1161_v0  ;;  %1158 = vmatpush3.bf16.msra.mxu1 %v1161_v0  ;;  %v1167_v6 = vld [vmem:[%s1596_s0 + $0x20] sm:$0xff]   ;;  %v1168_v7 = vld [vmem:[%s1596_s0 + $0x28] sm:$0xff]   ;;  %v1181_v8 = vld [vmem:[%s1596_s0 + $0x90] sm:$0xff]  }
   0x4   :  { %1090 = vmatprep.subr.bf16.mxu0 %v1162_v1  ;;  %1092 = vmatprep.mubr.msk.bf16.mxu0 %vm268_vm0, %v1163_v2  ;;  %v1182_v9 = vld [vmem:[%s1596_s0 + $0x98] sm:$0xff]   ;;  %v1183_v10 = vld [vmem:[%s1596_s0 + $0xa0] sm:$0xff]   ;;  %v1169_v11 = vld [vmem:[%s1596_s0 + $0x30] sm:$0xff]  }
   0x5   :  { %1157 = vmatprep.subr.bf16.mxu1 %v1162_v1  ;;  %1128 = vmatprep.mubr.msk.bf16.mxu1 %vm268_vm0, %v1181_v8  ;;  %v1184_v12 = vld [vmem:[%s1596_s0 + $0xa8] sm:$0xff]   ;;  %v1185_v13 = vld [vmem:[%s1596_s0 + $0xb0] sm:$0xff]   ;;  %v1170_v14 = vld [vmem:[%s1596_s0 + $0x38] sm:$0xff]  }
   0x6   :  { %v1171_v15 = vld [vmem:[%s1596_s0 + $0x40] sm:$0xff]   ;;  %v1186_v16 = vld [vmem:[%s1596_s0 + $0xb8] sm:$0xff]   ;;  %v1172_v18 = vld [vmem:[%s1596_s0 + $0x48] sm:$0xff]  }
   0x7   :  { %1091 = vmatpush3.bf16.msra.mxu0 %v1162_v1  ;;  %1159 = vmatpush3.bf16.msra.mxu1 %v1162_v1  ;;  %v1187_v17 = vld [vmem:[%s1596_s0 + $0xc0] sm:$0xff]   ;;  %v1173_v19 = vld [vmem:[%s1596_s0 + $0x50] sm:$0xff]   ;;  %v1188_v20 = vld [vmem:[%s1596_s0 + $0xc8] sm:$0xff]  }
   0x8   :  { %v1189_v21 = vld [vmem:[%s1596_s0 + $0xd0] sm:$0xff]   ;;  %v1174_v22 = vld [vmem:[%s1596_s0 + $0x58] sm:$0xff]   ;;  %v1175_v23 = vld [vmem:[%s1596_s0 + $0x60] sm:$0xff]  }
   0x9   :  { %v1190_v24 = vld [vmem:[%s1596_s0 + $0xd8] sm:$0xff]   ;;  %v1191_v25 = vld [vmem:[%s1596_s0 + $0xe0] sm:$0xff]   ;;  %v1176_v26 = vld [vmem:[%s1596_s0 + $0x68] sm:$0xff]  }
   0xa   :  { %1093 = vmatmul.mubr.msk.bf16.vlgmr.msra.gmra.mrb[0].mxu0 %vm268_vm0, %v1164_v3  ;;  %1129 = vmatmul.mubr.msk.bf16.vlgmr.msra.gmra.mrb[0].mxu1 %vm268_vm0, %v1182_v9  ;;  %v1177_v27 = vld [vmem:[%s1596_s0 + $0x70] sm:$0xff]   ;;  %v1192_v28 = vld [vmem:[%s1596_s0 + $0xe8] sm:$0xff]   ;;  %v1178_v30 = vld [vmem:[%s1596_s0 + $0x78] sm:$0xff]  }
   0xb   :  { %1096 = vmatprep.mubr.msk.bf16.mxu0 %vm268_vm0, %v1165_v4  ;;  %1132 = vmatprep.mubr.msk.bf16.mxu1 %vm268_vm0, %v1183_v10  ;;  %v1193_v29 = vld [vmem:[%s1596_s0 + $0xf0] sm:$0xff]   ;;  %v1179_v31 = vld [vmem:[%s1596_s0 + $0x80] sm:$0xff]   ;;  %v1194_v32 = vld [vmem:[%s1596_s0 + $0xf8] sm:$0xff]  }
   0xc   :  { %v1180_v33 = vld [vmem:[%s1596_s0 + $0x88] sm:$0xff]   ;;  %v1198_v36 = vld [vmem:[%s1597_s3 + $0x10] ss:$8 sps:$4 sm:$0xff]   ;;  %v1200_v37 = vld [vmem:[%s1597_s3 + $0x14] ss:$8 sps:$4 sm:$0xff]  }
   0xd   :  { %v1195_v34 = vld [vmem:[%s1597_s3] ss:$8 sps:$4 sm:$0xff]   ;;  %v1197_v35 = vld [vmem:[%s1597_s3 + $0x4] ss:$8 sps:$4 sm:$0xff]   ;;  %v1204_v40 = vld [vmem:[%s1597_s3 + $0x30] ss:$8 sps:$4 sm:$0xff]  }
   0xe   :  { %913 = vmatprep.subr.bf16.mxu1 %v1197_v35  ;;  %v1201_v38 = vld [vmem:[%s1597_s3 + $0x20] ss:$8 sps:$4 sm:$0xff]   ;;  %v1203_v39 = vld [vmem:[%s1597_s3 + $0x24] ss:$8 sps:$4 sm:$0xff]   ;;  %v1206_v41 = vld [vmem:[%s1597_s3 + $0x34] ss:$8 sps:$4 sm:$0xff]  }
   0xf   :  { %914 = vmatpush1.bf16.msra.mxu1 %v1195_v34  ;;  %v1411_v42 = vld [vmem:[%s1598_s2] ss:$0 sm:$0xff]  ;;  %v1209_v57 = vld [vmem:[%s1597_s3 + $0x44] ss:$8 sps:$4 sm:$0xff]   ;;  %v1210_v10 = vld [vmem:[%s1597_s3 + $0x50] ss:$8 sps:$4 sm:$0xff]  }
  0x10   :  { %915 = vmatprep.subr.bf16.mxu1 %v1200_v37  ;;  %v1207_v62 = vld [vmem:[%s1597_s3 + $0x40] ss:$8 sps:$4 sm:$0xff]   ;;  %v1216_v34 = vld [vmem:[%s1597_s3 + $0x70] ss:$8 sps:$4 sm:$0xff]  }
  0x12   :  { %1097 = vmatmul.mubr.msk.bf16.gmra.mrb[4].mxu0 %vm268_vm0, %v1166_v5  ;;  %1133 = vmatmul.mubr.msk.bf16.gmra.mrb[4].mxu1 %vm268_vm0, %v1184_v12  ;;  %v1212_v5 = vld [vmem:[%s1597_s3 + $0x54] ss:$8 sps:$4 sm:$0xff]  }
  0x13   :  { %1100 = vmatprep.mubr.msk.bf16.mxu0 %vm268_vm0, %v1167_v6  ;;  %1136 = vmatprep.mubr.msk.bf16.mxu1 %vm268_vm0, %v1185_v13 }
  0x14   :  { %916 = vmatpush1.bf16.msra.mxu1 %v1198_v36  ;;  %v1219_v36 = vmov 0  }
  0x15   :  { %917 = vmatprep.subr.bf16.mxu1 %v1203_v39 }
  0x18   :  { %918 = vmatpush1.bf16.msra.mxu1 %v1201_v38 }
  0x19   :  { %919 = vmatprep.subr.bf16.mxu1 %v1206_v41 }
  0x1a   :  { %1101 = vmatmul.mubr.msk.bf16.gmra.mrb[8].mxu0 %vm268_vm0, %v1168_v7  ;;  %1137 = vmatmul.mubr.msk.bf16.gmra.mrb[8].mxu1 %vm268_vm0, %v1186_v16 }
  0x1b   :  { %1104 = vmatprep.mubr.msk.bf16.mxu0 %vm268_vm0, %v1169_v11  ;;  %1140 = vmatprep.mubr.msk.bf16.mxu1 %vm268_vm0, %v1187_v17  ;;  %v1215_v17 = vld [vmem:[%s1597_s3 + $0x64] ss:$8 sps:$4 sm:$0xff]  }
  0x1c   :  { %920 = vmatpush1.bf16.msra.mxu1 %v1204_v40 }
  0x1d   :  { %921 = vmatprep.subr.bf16.mxu1 %v1209_v57 }
  0x20   :  { %922 = vmatpush1.bf16.msra.mxu1 %v1207_v62 }
  0x21   :  { %923 = vmatprep.subr.bf16.mxu1 %v1212_v5 }
  0x22   :  { %1105 = vmatmul.mubr.msk.bf16.gmra.mrb[12].mxu0 %vm268_vm0, %v1170_v14  ;;  %1141 = vmatmul.mubr.msk.bf16.gmra.mrb[12].mxu1 %vm268_vm0, %v1188_v20 }
  0x23   :  { %1108 = vmatprep.mubr.msk.bf16.mxu0 %vm268_vm0, %v1171_v15  ;;  %1144 = vmatprep.mubr.msk.bf16.mxu1 %vm268_vm0, %v1189_v21 }
  0x24   :  { %924 = vmatpush1.bf16.msra.mxu1 %v1210_v10 }
  0x25   :  { %925 = vmatprep.subr.bf16.mxu1 %v1215_v17 }
  0x2a   :  { %1109 = vmatmul.mubr.msk.bf16.gmra.mrb[16].mxu0 %vm268_vm0, %v1172_v18  ;;  %1145 = vmatmul.mubr.msk.bf16.gmra.mrb[16].mxu1 %vm268_vm0, %v1190_v24 }
  0x2b   :  { %1112 = vmatprep.mubr.msk.bf16.mxu0 %vm268_vm0, %v1173_v19  ;;  %1148 = vmatprep.mubr.msk.bf16.mxu1 %vm268_vm0, %v1191_v25 }
  0x32   :  { %1113 = vmatmul.mubr.msk.bf16.gmra.mrb[20].mxu0 %vm268_vm0, %v1174_v22  ;;  %1149 = vmatmul.mubr.msk.bf16.gmra.mrb[20].mxu1 %vm268_vm0, %v1192_v28  ;;  %v1213_v22 = vld [vmem:[%s1597_s3 + $0x60] ss:$8 sps:$4 sm:$0xff]  }
  0x33   :  { %1116 = vmatprep.mubr.msk.bf16.mxu0 %vm268_vm0, %v1175_v23  ;;  %1152 = vmatprep.mubr.msk.bf16.mxu1 %vm268_vm0, %v1193_v29  ;;  %v1218_v29 = vld [vmem:[%s1597_s3 + $0x74] ss:$8 sps:$4 sm:$0xff]  }
  0x34   :  { %926 = vmatpush1.bf16.msra.mxu1 %v1213_v22 }
  0x35   :  { %927 = vmatprep.subr.bf16.mxu1 %v1218_v29 }
  0x38   :  { %928 = vmatpush1.bf16.msra.mxu1 %v1216_v34 }
  0x3a   :  { %1117 = vmatmul.mubr.msk.bf16.gmra.mrb[24].mxu0 %vm268_vm0, %v1176_v26  ;;  %1153 = vmatmul.mubr.msk.bf16.gmra.mrb[24].mxu1 %vm268_vm0, %v1194_v32 }
  0x3b   :  { %1120 = vmatprep.mubr.msk.bf16.mxu0 %vm268_vm0, %v1177_v27  ;;  %945 = vmatprep.mubr.bf16.mxu1 %v1219_v36 }
  0x42   :  { %1121 = vmatmul.mubr.msk.bf16.gmra.mrb[28].mxu0 %vm268_vm0, %v1178_v30 }
  0x43   :  { %1124 = vmatprep.mubr.msk.bf16.mxu0 %vm268_vm0, %v1179_v31 }
  0x4a   :  { %1125 = vmatmul.mubr.msk.bf16.gmra.mrb[32].mxu0 %vm268_vm0, %v1180_v33 }
  0xdd   :  { %v1094_v43 = vpop.f32.mrb[0].mxu0  ;;  %v1426_v4 = vpop.f32.mrb[0].mxu1 }
  0xde   :  { %v399_v44 = vpop.f32.mrb[1].mxu0  ;;  %v408_v48 = vadd.f32 %v1094_v43, %v1411_v42  ;;  %v1432_v9 = vpop.f32.mrb[1].mxu1 }
  0xdf   :  { %v400_v45 = vadd.f32 %v1411_v42, %v399_v44  ;;  %v1095_v46 = vpop.f32.mrb[2].mxu0  ;;  %v1437_v11 = vpop.f32.mrb[2].mxu1 }
  0xe0   :  { %v402_v47 = vpop.f32.mrb[3].mxu0  ;;  %v411_v51 = vadd.f32 %v1095_v46, %v1411_v42  ;;  %v656_v53 = vmax.f32 %v408_v48, 0.0  ;;  %v1439_v15 = vpop.f32.mrb[3].mxu1 }
  0xe1   :  { %v403_v49 = vadd.f32 %v1411_v42, %v402_v47  ;;  %v654_v50 = vmax.f32 %v400_v45, 0.0 }
  0xe2   :  { %v657_v58 = vmax.f32 %v411_v51, 0.0 }
  0xe3   :  { %v655_v52 = vmax.f32 %v403_v49, 0.0 }
  0xe5   :  { %v718_v54 = vadd.f32 %v655_v52, %v654_v50  ;;  %v1098_v55 = vpop.f32.mrb[4].mxu0  ;;  %v1450_v28 = vpop.f32.mrb[4].mxu1 }
  0xe6   :  { %v415_v56 = vpop.f32.mrb[5].mxu0  ;;  %v424_v0 = vadd.f32 %v1098_v55, %v1411_v42  ;;  %v1456_v33 = vpop.f32.mrb[5].mxu1 }
  0xe7   :  { %v719_v59 = vadd.f32 %v718_v54, %v656_v53  ;;  %v416_v60 = vadd.f32 %v1411_v42, %v415_v56  ;;  %v1099_v61 = vpop.f32.mrb[6].mxu0  ;;  %v1461_v35 = vpop.f32.mrb[6].mxu1 }
  0xe8   :  { %v418_v63 = vpop.f32.mrb[7].mxu0  ;;  %v427_v7 = vadd.f32 %v1099_v61, %v1411_v42  ;;  %v660_v12 = vmax.f32 %v424_v0, 0.0  ;;  %v1463_v40 = vpop.f32.mrb[7].mxu1 }
  0xe9   :  { %v658_v1 = vmax.f32 %v416_v60, 0.0  ;;  %v720_v2 = vadd.f32 %v719_v59, %v657_v58  ;;  %v419_v3 = vadd.f32 %v1411_v42, %v418_v63 }
  0xea   :  { %v661_v18 = vmax.f32 %v427_v7, 0.0 }
  0xeb   :  { %v721_v6 = vadd.f32 %v720_v2, %v658_v1  ;;  %v659_v8 = vmax.f32 %v419_v3, 0.0 }
  0xed   :  { %v722_v13 = vadd.f32 %v721_v6, %v659_v8  ;;  %v1102_v14 = vpop.f32.mrb[8].mxu0  ;;  %v1468_v52 = vpop.f32.mrb[8].mxu1 }
  0xee   :  { %v431_v16 = vpop.f32.mrb[9].mxu0  ;;  %v440_v24 = vadd.f32 %v1102_v14, %v1411_v42  ;;  %v1471_v56 = vpop.f32.mrb[9].mxu1 }
  0xef   :  { %v723_v19 = vadd.f32 %v722_v13, %v660_v12  ;;  %v432_v20 = vadd.f32 %v1411_v42, %v431_v16  ;;  %v1103_v21 = vpop.f32.mrb[10].mxu0  ;;  %v1473_v57 = vpop.f32.mrb[10].mxu1 }
  0xf0   :  { %v434_v23 = vpop.f32.mrb[11].mxu0  ;;  %v443_v31 = vadd.f32 %v1103_v21, %v1411_v42  ;;  %v664_v37 = vmax.f32 %v440_v24, 0.0  ;;  %v1475_v61 = vpop.f32.mrb[11].mxu1 }
  0xf1   :  { %v662_v25 = vmax.f32 %v432_v20, 0.0  ;;  %v724_v26 = vadd.f32 %v723_v19, %v661_v18  ;;  %v435_v27 = vadd.f32 %v1411_v42, %v434_v23 }
  0xf2   :  { %v665_v43 = vmax.f32 %v443_v31, 0.0 }
  0xf3   :  { %v725_v30 = vadd.f32 %v724_v26, %v662_v25  ;;  %v663_v32 = vmax.f32 %v435_v27, 0.0 }
  0xf5   :  { %v726_v38 = vadd.f32 %v725_v30, %v663_v32  ;;  %v1106_v39 = vpop.f32.mrb[12].mxu0  ;;  %v1480_v10 = vpop.f32.mrb[12].mxu1 }
  0xf6   :  { %v447_v41 = vpop.f32.mrb[13].mxu0  ;;  %v456_v48 = vadd.f32 %v1106_v39, %v1411_v42  ;;  %v1483_v16 = vpop.f32.mrb[13].mxu1 }
  0xf7   :  { %v727_v44 = vadd.f32 %v726_v38, %v664_v37  ;;  %v448_v45 = vadd.f32 %v1411_v42, %v447_v41  ;;  %v1107_v46 = vpop.f32.mrb[14].mxu0  ;;  %v1485_v17 = vpop.f32.mrb[14].mxu1 }
  0xf8   :  { %v450_v47 = vpop.f32.mrb[15].mxu0  ;;  %v459_v54 = vadd.f32 %v1107_v46, %v1411_v42  ;;  %v668_v58 = vmax.f32 %v456_v48, 0.0  ;;  %v1487_v21 = vpop.f32.mrb[15].mxu1 }
  0xf9   :  { %v666_v49 = vmax.f32 %v448_v45, 0.0  ;;  %v728_v50 = vadd.f32 %v727_v44, %v665_v43  ;;  %v451_v51 = vadd.f32 %v1411_v42, %v450_v47 }
  0xfa   :  { %v669_v63 = vmax.f32 %v459_v54, 0.0 }
  0xfb   :  { %v729_v53 = vadd.f32 %v728_v50, %v666_v49  ;;  %v667_v55 = vmax.f32 %v451_v51, 0.0 }
  0xfd   :  { %v730_v59 = vadd.f32 %v729_v53, %v667_v55  ;;  %v1110_v60 = vpop.f32.mrb[16].mxu0  ;;  %v1492_v34 = vpop.f32.mrb[16].mxu1 }
  0xfe   :  { %v463_v62 = vpop.f32.mrb[17].mxu0  ;;  %v472_v5 = vadd.f32 %v1110_v60, %v1411_v42  ;;  %v1495_v39 = vpop.f32.mrb[17].mxu1 }
  0xff   :  { %v731_v0 = vadd.f32 %v730_v59, %v668_v58  ;;  %v464_v1 = vadd.f32 %v1411_v42, %v463_v62  ;;  %v1111_v2 = vpop.f32.mrb[18].mxu0  ;;  %v1497_v41 = vpop.f32.mrb[18].mxu1 }
 0x100   :  { %v466_v3 = vpop.f32.mrb[19].mxu0  ;;  %v475_v13 = vadd.f32 %v1111_v2, %v1411_v42  ;;  %v672_v18 = vmax.f32 %v472_v5, 0.0  ;;  %v1499_v46 = vpop.f32.mrb[19].mxu1 }
 0x101   :  { %v670_v6 = vmax.f32 %v464_v1, 0.0  ;;  %v732_v7 = vadd.f32 %v731_v0, %v669_v63  ;;  %v467_v8 = vadd.f32 %v1411_v42, %v466_v3 }
 0x102   :  { %v673_v23 = vmax.f32 %v475_v13, 0.0 }
 0x103   :  { %v733_v12 = vadd.f32 %v732_v7, %v670_v6  ;;  %v671_v14 = vmax.f32 %v467_v8, 0.0 }
 0x105   :  { %v734_v19 = vadd.f32 %v733_v12, %v671_v14  ;;  %v1114_v20 = vpop.f32.mrb[20].mxu0  ;;  %v1504_v60 = vpop.f32.mrb[20].mxu1 }
 0x106   :  { %v479_v22 = vpop.f32.mrb[21].mxu0  ;;  %v488_v29 = vadd.f32 %v1114_v20, %v1411_v42  ;;  %v1507_v1 = vpop.f32.mrb[21].mxu1 }
 0x107   :  { %v735_v24 = vadd.f32 %v734_v19, %v672_v18  ;;  %v480_v25 = vadd.f32 %v1411_v42, %v479_v22  ;;  %v1115_v26 = vpop.f32.mrb[22].mxu0  ;;  %v1509_v2 = vpop.f32.mrb[22].mxu1 }
 0x108   :  { %v482_v27 = vpop.f32.mrb[23].mxu0  ;;  %v491_v37 = vadd.f32 %v1115_v26, %v1411_v42  ;;  %v676_v43 = vmax.f32 %v488_v29, 0.0  ;;  %v1511_v7 = vpop.f32.mrb[23].mxu1 }
 0x109   :  { %v674_v30 = vmax.f32 %v480_v25, 0.0  ;;  %v736_v31 = vadd.f32 %v735_v24, %v673_v23  ;;  %v483_v32 = vadd.f32 %v1411_v42, %v482_v27 }
 0x10a   :  { %v677_v48 = vmax.f32 %v491_v37, 0.0 }
 0x10b   :  { %v737_v36 = vadd.f32 %v736_v31, %v674_v30  ;;  %v675_v38 = vmax.f32 %v483_v32, 0.0 }
 0x10d   :  { %v738_v44 = vadd.f32 %v737_v36, %v675_v38  ;;  %v1118_v45 = vpop.f32.mrb[24].mxu0  ;;  %v1516_v25 = vpop.f32.mrb[24].mxu1 }
 0x10e   :  { %v495_v47 = vpop.f32.mrb[25].mxu0  ;;  %v504_v54 = vadd.f32 %v1118_v45, %v1411_v42  ;;  %v1519_v30 = vpop.f32.mrb[25].mxu1 }
 0x10f   :  { %v739_v49 = vadd.f32 %v738_v44, %v676_v43  ;;  %v496_v50 = vadd.f32 %v1411_v42, %v495_v47  ;;  %v1119_v51 = vpop.f32.mrb[26].mxu0  ;;  %v1521_v31 = vpop.f32.mrb[26].mxu1 }
 0x110   :  { %v498_v53 = vpop.f32.mrb[27].mxu0  ;;  %v507_v63 = vadd.f32 %v1119_v51, %v1411_v42  ;;  %v680_v3 = vmax.f32 %v504_v54, 0.0  ;;  %v1523_v38 = vpop.f32.mrb[27].mxu1 }
 0x111   :  { %v678_v55 = vmax.f32 %v496_v50, 0.0  ;;  %v740_v58 = vadd.f32 %v739_v49, %v677_v48  ;;  %v499_v59 = vadd.f32 %v1411_v42, %v498_v53 }
 0x112   :  { %v681_v12 = vmax.f32 %v507_v63, 0.0 }
 0x113   :  { %v741_v62 = vadd.f32 %v740_v58, %v678_v55  ;;  %v679_v0 = vmax.f32 %v499_v59, 0.0  ;;  %v544_v59 = vadd.f32 %v1411_v42, %v1432_v9  ;;  %v560_v9 = vadd.f32 %v1411_v42, %v1456_v33 }
 0x114   :  { %v576_v33 = vadd.f32 %v1411_v42, %v1471_v56  ;;  %v592_v56 = vadd.f32 %v1411_v42, %v1483_v16  ;;  %v608_v16 = vadd.f32 %v1411_v42, %v1495_v39  ;;  %v624_v39 = vadd.f32 %v1411_v42, %v1507_v1 }
 0x115   :  { %v742_v5 = vadd.f32 %v741_v62, %v679_v0  ;;  %v1122_v6 = vpop.f32.mrb[28].mxu0  ;;  %v640_v1 = vadd.f32 %v1411_v42, %v1519_v30 }
 0x116   :  { %v511_v8 = vpop.f32.mrb[29].mxu0  ;;  %v520_v20 = vadd.f32 %v1122_v6, %v1411_v42  ;;  %v547_v6 = vadd.f32 %v1411_v42, %v1439_v15  ;;  %v563_v15 = vadd.f32 %v1411_v42, %v1463_v40  ;;  %v579_v40 = vadd.f32 %v1411_v42, %v1475_v61 }
 0x117   :  { %v743_v13 = vadd.f32 %v742_v5, %v680_v3  ;;  %v512_v14 = vadd.f32 %v1411_v42, %v511_v8  ;;  %v1123_v18 = vpop.f32.mrb[30].mxu0  ;;  %v690_v5 = vmax.f32 %v544_v59, 0.0  ;;  %v552_v8 = vadd.f32 %v1426_v4, %v1411_v42 }
 0x118   :  { %v514_v19 = vpop.f32.mrb[31].mxu0  ;;  %v523_v27 = vadd.f32 %v1123_v18, %v1411_v42  ;;  %v684_v32 = vmax.f32 %v520_v20, 0.0  ;;  %v691_v18 = vmax.f32 %v547_v6, 0.0  ;;  %v568_v4 = vadd.f32 %v1450_v28, %v1411_v42 }
 0x119   :  { %v682_v22 = vmax.f32 %v512_v14, 0.0  ;;  %v744_v23 = vadd.f32 %v743_v13, %v681_v12  ;;  %v515_v24 = vadd.f32 %v1411_v42, %v514_v19  ;;  %v555_v14 = vadd.f32 %v1437_v11, %v1411_v42 }
 0x11a   :  { %v685_v44 = vmax.f32 %v523_v27, 0.0  ;;  %v692_v19 = vmax.f32 %v552_v8, 0.0  ;;  %v571_v11 = vadd.f32 %v1461_v35, %v1411_v42  ;;  %v584_v28 = vadd.f32 %v1468_v52, %v1411_v42 }
 0x11b   :  { %v745_v26 = vadd.f32 %v744_v23, %v682_v22  ;;  %v683_v29 = vmax.f32 %v515_v24, 0.0  ;;  %v693_v22 = vmax.f32 %v555_v14, 0.0  ;;  %v694_v24 = vmax.f32 %v560_v9, 0.0 }
 0x11c   :  { %v587_v35 = vadd.f32 %v1473_v57, %v1411_v42  ;;  %v595_v61 = vadd.f32 %v1411_v42, %v1487_v21  ;;  %v600_v52 = vadd.f32 %v1480_v10, %v1411_v42  ;;  %v603_v57 = vadd.f32 %v1485_v17, %v1411_v42 }
 0x11d   :  { %v746_v36 = vadd.f32 %v745_v26, %v683_v29  ;;  %v1126_v37 = vpop.f32.mrb[32].mxu0  ;;  %v695_v29 = vmax.f32 %v563_v15, 0.0  ;;  %v706_v6 = vmax.f32 %v608_v16, 0.0  ;;  %v611_v21 = vadd.f32 %v1411_v42, %v1499_v46  ;;  %v813_v16 = vld [vmem:[%s1599_s4] sm:$0x3] }
 0x11e   :  { %v527_v43 = vpop.f32.mrb[33].mxu0  ;;  %v536_v51 = vadd.f32 %v1126_v37, %v1411_v42  ;;  %v697_v37 = vmax.f32 %v571_v11, 0.0  ;;  %v616_v10 = vadd.f32 %v1492_v34, %v1411_v42  ;;  %v619_v17 = vadd.f32 %v1497_v41, %v1411_v42 }
 0x11f   :  { %v747_v45 = vadd.f32 %v746_v36, %v684_v32  ;;  %v528_v47 = vadd.f32 %v1411_v42, %v527_v43  ;;  %v1127_v48 = vpop.f32.mrb[34].mxu0  ;;  %v696_v32 = vmax.f32 %v568_v4, 0.0  ;;  %v627_v46 = vadd.f32 %v1411_v42, %v1511_v7 }
 0x120   :  { %v530_v49 = vpop.f32.mrb[35].mxu0  ;;  %v539_v55 = vadd.f32 %v1127_v48, %v1411_v42  ;;  %v688_v62 = vmax.f32 %v536_v51, 0.0  ;;  %v699_v48 = vmax.f32 %v579_v40, 0.0  ;;  %v708_v14 = vmax.f32 %v616_v10, 0.0 }
 0x121   :  { %v1526_v50 = vadd.f32 %v747_v45, %v685_v44  ;;  %v531_v53 = vadd.f32 %v1411_v42, %v530_v49  ;;  %v686_v54 = vmax.f32 %v528_v47, 0.0  ;;  %v698_v44 = vmax.f32 %v576_v33, 0.0 }
 0x122   :  { %v689_v0 = vmax.f32 %v539_v55, 0.0  ;;  %v700_v49 = vmax.f32 %v584_v28, 0.0  ;;  %v702_v55 = vmax.f32 %v592_v56, 0.0  ;;  %v709_v9 = vmax.f32 %v619_v17, 0.0 }
 0x123   :  { %v687_v58 = vmax.f32 %v531_v53, 0.0  ;;  %v701_v53 = vmax.f32 %v587_v35, 0.0  ;;  %v632_v34 = vadd.f32 %v1504_v60, %v1411_v42  ;;  %v749_v41 = vrot.slane %v1526_v50, 4 }
 0x124   :  { %v711_v15 = vmax.f32 %v627_v46, 0.0  ;;  %v643_v60 = vadd.f32 %v1411_v42, %v1523_v38 }
 0x125   :  { %v755_v63 = vadd.f32 %v687_v58, %v686_v54  ;;  %v712_v4 = vmax.f32 %v632_v34, 0.0  ;;  %v750_v11 = vadd.f32 %v749_v41, %v1526_v50 }
 0x126   :  { %v715_v30 = vmax.f32 %v643_v60, 0.0 }
 0x127   :  { %v756_v3 = vadd.f32 %v755_v63, %v688_v62  ;;  %v703_v62 = vmax.f32 %v595_v61, 0.0  ;;  %v704_v63 = vmax.f32 %v600_v52, 0.0 }
 0x129   :  { %v757_v12 = vadd.f32 %v756_v3, %v689_v0  ;;  %v705_v3 = vmax.f32 %v603_v57, 0.0 }
 0x12b   :  { %v758_v13 = vadd.f32 %v757_v12, %v690_v5 }
 0x12d   :  { %v759_v20 = vadd.f32 %v758_v13, %v691_v18  ;;  %v707_v13 = vmax.f32 %v611_v21, 0.0 }
 0x12f   :  { %v760_v23 = vadd.f32 %v759_v20, %v692_v19  ;;  %v710_v20 = vmax.f32 %v624_v39, 0.0 }
 0x131   :  { %v761_v26 = vadd.f32 %v760_v23, %v693_v22  ;;  %v635_v23 = vadd.f32 %v1509_v2, %v1411_v42  ;;  %v648_v2 = vadd.f32 %v1516_v25, %v1411_v42 }
 0x133   :  { %v762_v27 = vadd.f32 %v761_v26, %v694_v24 }
 0x135   :  { %v763_v36 = vadd.f32 %v762_v27, %v695_v29  ;;  %v713_v27 = vmax.f32 %v635_v23, 0.0  ;;  %v714_v29 = vmax.f32 %v640_v1, 0.0 }
 0x137   :  { %v764_v43 = vadd.f32 %v763_v36, %v696_v32  ;;  %v751_v32 = vrot.slane %v750_v11, 2 }
 0x139   :  { %v765_v45 = vadd.f32 %v764_v43, %v697_v37  ;;  %v651_v37 = vadd.f32 %v1521_v31, %v1411_v42  ;;  %v716_v43 = vmax.f32 %v648_v2, 0.0  ;;  %v752_v40 = vadd.f32 %v751_v32, %v750_v11 }
 0x13b   :  { %v766_v47 = vadd.f32 %v765_v45, %v698_v44  ;;  %v717_v28 = vmax.f32 %v651_v37, 0.0 }
 0x13d   :  { %v767_v51 = vadd.f32 %v766_v47, %v699_v48  ;;  %v753_v47 = vrot.slane %v752_v40, 1 }
 0x13f   :  { %v768_v54 = vadd.f32 %v767_v51, %v700_v49  ;;  %v754_v38 = vadd.f32 %v753_v47, %v752_v40 }
 0x141   :  { %v769_v58 = vadd.f32 %v768_v54, %v701_v53  ;;  %v793_v25 = vmul.f32 0.00390625, %v754_v38 }
 0x143   :  { %v770_v59 = vadd.f32 %v769_v58, %v702_v55  ;;  %v795_v54 = vpack.c.bf16 %v793_v25, %v793_v25 }
 0x145   :  { %v771_v0 = vadd.f32 %v770_v59, %v703_v62  ;;  %v827_v42 = vunpack.c.l.b16 %v795_v54  ;;  %v815_v59 = vlaneseq }
 0x147   :  { %v772_v5 = vadd.f32 %v771_v0, %v704_v63  ;;  %v816_v57 = vshrl.u32 %v815_v59, 7 }
 0x149   :  { %v773_v8 = vadd.f32 %v772_v5, %v705_v3  ;;  %v817_v62 = vsub.s32 0, %v816_v57  ;;  %v821_v63 = vsub.s32 1, %v816_v57 }
 0x14b   :  { %v774_v12 = vadd.f32 %v773_v8, %v706_v6  ;;  %v818_v0 = vrot.slane %v813_v16, %v817_v62  ;;  %v822_v3 = vrot.slane %v813_v16, %v821_v63 }
 0x14d   :  { %v775_v18 = vadd.f32 %v774_v12, %v707_v13 }
 0x14f   :  { %v776_v19 = vadd.f32 %v775_v18, %v708_v14 }
 0x151   :  { %v777_v22 = vadd.f32 %v776_v19, %v709_v9 }
 0x153   :  { %v778_v24 = vadd.f32 %v777_v22, %v710_v20 }
 0x155   :  { %v779_v26 = vadd.f32 %v778_v24, %v711_v15 }
 0x157   :  { %v780_v7 = vadd.f32 %v779_v26, %v712_v4 }
 0x159   :  { %v781_v33 = vadd.f32 %v780_v7, %v713_v27 }
 0x15b   :  { %v782_v36 = vadd.f32 %v781_v33, %v714_v29 }
 0x15d   :  { %v783_v44 = vadd.f32 %v782_v36, %v715_v30 }
 0x15f   :  { %v784_v50 = vadd.f32 %v783_v44, %v716_v43 }
 0x161   :  { %v785_v45 = vadd.f32 %v784_v50, %v717_v28 }
 0x163   :  { %v786_v35 = vrot.slane %v785_v45, 4 }
 0x165   :  { %v787_v48 = vadd.f32 %v786_v35, %v785_v45 }
 0x167   :  { %v788_v56 = vrot.slane %v787_v48, 2 }
 0x169   :  { %v789_v49 = vadd.f32 %v788_v56, %v787_v48 }
 0x16b   :  { %v790_v51 = vrot.slane %v789_v49, 1 }
 0x16d   :  { %v791_v53 = vadd.f32 %v790_v51, %v789_v49 }
 0x16f   :  { %v794_v55 = vmul.f32 0.00390625, %v791_v53 }
 0x171   :  { %v796_v61 = vpack.c.bf16 %v794_v55, %v794_v55 }
 0x173   :  { %v828_v31 = vunpack.c.l.b16 %v796_v61 }
 0x175   :  { %v830_v52 = vsel %vm829_vm1, %v828_v31, %v827_v42 }
 0x176   :  { %v831_v58 = vpack.c.b16 %v830_v52, %v830_v52 }
 0x178   :  { %946 = vmatmul.mubr.bf16.vlgmr.msra.gmra.mrb[28].mxu1 %v831_v58 }
 0x24b   :  { %v947_v5 = vpop.f32.mrb[28].mxu1 }
 0x24c   :  { %v948_v6 = vadd.f32 %v947_v5, %v818_v0  ;;  %v949_v21 = vpop.f32.mrb[29].mxu1 }
 0x24d   :  { %v950_v10 = vadd.f32 %v949_v21, %v822_v3  ;;  %v951_v8 = vpop.f32.mrb[30].mxu1 }
 0x24e   :  { %v952_v12 = vpop.f32.mrb[31].mxu1 }
 0x24f   :  { %v956_v17 = vcombine.low %v948_v6, %v950_v10 }
 0x251   :  { %1053 = vst.sshfl [vmem:[%s1600_s5] sm:$0x33 pattern:$0x76325410] %v956_v17 }

</bundles_post_ra>
